<compile_context>
chip_gen: v5e
topology: v5e:2x2
jax: 0.10.0
libtpu: 0.0.40
codegen_flags: <defaults>
</compile_context>

<pallas_src>
import numpy as np
import jax
import jax.numpy as jnp
from jax import lax
from jax.experimental import pallas as pl
from jax.experimental.pallas import tpu as pltpu


def decoder_kernel(zc_ref, fc_w_ref, fc_b_ref,
                   w_ih_ref, w_hh_ref, b_ref,
                   out_w_ref, out_b_ref,
                   out_ref):
    """Fused: fc+relu -> unrolled LSTM recurrence with per-step (BN-folded)
    out-projection into a lane-dense (B, T*O) slab -> bias + tanh."""
    B = zc_ref.shape[0]                 # padded batch (multiple of 8)
    H = w_hh_ref.shape[0]
    O = out_w_ref.shape[1]
    T = out_ref.shape[1] // O           # static seq_len

    # fc + relu : (B, D)
    zc = jnp.maximum(
        jnp.dot(zc_ref[...], fc_w_ref[...], preferred_element_type=jnp.float32)
        + fc_b_ref[...],
        0.0)

    # LSTM input is z_cond repeated seq_len times -> the input projection
    # x @ W_ih^T + (b_ih + b_hh) is constant across timesteps; compute once.
    # (g-gate columns of w_ih/b are pre-scaled by 2 in the wrapper.)
    x_proj = (jnp.dot(zc, w_ih_ref[...], preferred_element_type=jnp.float32)
              + b_ref[...])                                   # (B, 4H)

    # Hoist weight loads out of the recurrence.
    w_hh = w_hh_ref[...]                                      # (H, 4H), g cols x2
    out_w = out_w_ref[...]                                    # (H, O), BN-folded

    h = jnp.zeros((B, H), jnp.float32)
    c = jnp.zeros((B, H), jnp.float32)

    # Fully unrolled recurrence: T is a compile-time constant, h/c stay in
    # vregs, and the LLO scheduler sees all iterations at once.
    for t in range(T):
        gates = x_proj + jnp.dot(h, w_hh, preferred_element_type=jnp.float32)  # (B, 4H)
        # ONE transcendental push over the whole gate slab; recover the g gate
        # with a VALU fma since tanh(x) = 2*sigmoid(2x) - 1 (its inputs were
        # pre-scaled by 2 in the wrapper).  PyTorch gate order: i, f, g, o.
        sg = jax.nn.sigmoid(gates)
        i = sg[:, 0 * H:1 * H]
        f = sg[:, 1 * H:2 * H]
        g = 2.0 * sg[:, 2 * H:3 * H] - 1.0
        o = sg[:, 3 * H:4 * H]
        c = f * c + i * g
        h = o * jnp.tanh(c)
        # Off the serial chain: project h_t with the BN-folded fc_out weights
        # and drop it into its lane block of the lane-dense output slab.
        out_ref[:, t * O:(t + 1) * O] = jnp.dot(
            h, out_w, preferred_element_type=jnp.float32)

    # Epilogue: one bias add + one tanh + one unmasked full-lane (8,128) store.
    out_ref[...] = jnp.tanh(out_ref[...] + out_b_ref[...])


def make_params(key, latent_dim, cond_dim, hidden_dim, output_dim):
    D = latent_dim + cond_dim
    H = hidden_dim
    ks = jax.random.split(key, 10)

    def u(k, shape, fan_in):
        b = 1.0 / np.sqrt(fan_in)
        return jax.random.uniform(k, shape, jnp.float32, -b, b)

    return dict(
        # nn.Linear(D, D): stored transposed so the kernel does x @ W
        fc_w=u(ks[0], (D, D), D),
        fc_b=u(ks[1], (1, D), D),
        # nn.LSTM(D, H): weight_ih (4H, D), weight_hh (4H, H) stored transposed;
        # combined bias = b_ih + b_hh.
        w_ih=u(ks[2], (D, 4 * H), H),
        w_hh=u(ks[3], (H, 4 * H), H),
        b=u(ks[4], (1, 4 * H), H) + u(ks[5], (1, 4 * H), H),
        # nn.BatchNorm1d(H) — inference mode
        gamma=jnp.ones((1, H), jnp.float32) + 0.1 * jax.random.normal(ks[6], (1, H), jnp.float32),
        beta=0.1 * jax.random.normal(ks[7], (1, H), jnp.float32),
        mean=jnp.zeros((1, H), jnp.float32),
        var=jnp.ones((1, H), jnp.float32),
        # nn.Linear(H, output_dim)
        out_w=u(ks[8], (H, output_dim), H),
        out_b=u(ks[9], (1, output_dim), H),
    )


def decoder_forward(z, cond, params, seq_len):
    zc = jnp.concatenate([z, cond], axis=-1)          # glue: trivial concat
    B = zc.shape[0]
    H = params["w_hh"].shape[0]
    O = params["out_w"].shape[1]
    T = seq_len

    # Fold inference-mode BatchNorm into fc_out (one-time O(H*O) op on tiny params):
    #   hn = h*scale + (beta - mean*scale),  scale = gamma / sqrt(var + eps)
    #   hn @ W + b = h @ (scale[:,None]*W) + (b + (beta - mean*scale) @ W)
    scale = params["gamma"] * lax.rsqrt(params["var"] + 1e-5)          # (1, H)
    out_w_eff = params["out_w"] * scale.reshape(H, 1)                  # (H, O)
    out_b_eff = params["out_b"] + (params["beta"] - params["mean"] * scale) @ params["out_w"]
    out_b_tiled = jnp.tile(out_b_eff, (1, T))                          # (1, T*O)

    # Pre-scale the g-gate columns by 2 so the kernel only needs one sigmoid
    # over the gate slab (tanh(x) = 2*sigmoid(2x) - 1).
    def scale_g(w):
        return jnp.concatenate(
            [w[..., :2 * H], 2.0 * w[..., 2 * H:3 * H], w[..., 3 * H:]], axis=-1)
    w_ih_eff = scale_g(params["w_ih"])                                 # (D, 4H)
    w_hh_eff = scale_g(params["w_hh"])                                 # (H, 4H)
    b_eff = scale_g(params["b"])                                       # (1, 4H)

    # Pad batch to a multiple of 8 so fp32 sublanes are filled; padded rows
    # produce garbage that is sliced off after the kernel (never reduced over).
    B_pad = max(8, ((B + 7) // 8) * 8)
    if B_pad != B:
        zc = jnp.pad(zc, ((0, B_pad - B), (0, 0)))

    out = pl.pallas_call(
        decoder_kernel,
        out_shape=jax.ShapeDtypeStruct((B_pad, T * O), jnp.float32),   # lane-dense (8,128)
        in_specs=[pl.BlockSpec(memory_space=pltpu.MemorySpace.VMEM)] * 8,
        out_specs=pl.BlockSpec(memory_space=pltpu.MemorySpace.VMEM),
    )(zc, params["fc_w"], params["fc_b"],
      w_ih_eff, w_hh_eff, b_eff,
      out_w_eff, out_b_tiled)

    # (B_pad, T*O) -> (B, T, O): row-major lane blocks are already batch-first,
    # so this is a free reshape (no transpose).
    return out[:B].reshape(B, T, O)


def decoder_ref(z, cond, params, seq_len):
    """Pure-JAX reference mirroring the PyTorch forward (eval mode)."""
    zc = jnp.concatenate([z, cond], axis=-1)
    zc = jax.nn.relu(zc @ params["fc_w"] + params["fc_b"])
    H = params["w_hh"].shape[0]
    B = zc.shape[0]
    x_proj = zc @ params["w_ih"] + params["b"]

    def step(carry, _):
        h, c = carry
        gates = x_proj + h @ params["w_hh"]
        i = jax.nn.sigmoid(gates[:, :H])
        f = jax.nn.sigmoid(gates[:, H:2 * H])
        g = jnp.tanh(gates[:, 2 * H:3 * H])
        o = jax.nn.sigmoid(gates[:, 3 * H:])
        c = f * c + i * g
        h = o * jnp.tanh(c)
        return (h, c), h

    init = (jnp.zeros((B, H), jnp.float32), jnp.zeros((B, H), jnp.float32))
    _, hs = lax.scan(step, init, None, length=seq_len)      # (T, B, H)
    hs = jnp.transpose(hs, (1, 0, 2))                       # (B, T, H)
    # BatchNorm1d applied on the permuted (B, H, T) tensor == per-H-feature.
    hn = ((hs - params["mean"]) / jnp.sqrt(params["var"] + 1e-5)
          * params["gamma"] + params["beta"])
    return jnp.tanh(hn @ params["out_w"] + params["out_b"])


if __name__ == "__main__":
    # Small shapes consistent with Decoder(latent_dim, cond_dim, hidden_dim,
    # output_dim, seq_len)
    B, latent_dim, cond_dim, hidden_dim, output_dim, seq_len = 2, 8, 8, 32, 16, 8

    key = jax.random.PRNGKey(0)
    kz, kc, kp = jax.random.split(key, 3)
    z = jax.random.normal(kz, (B, latent_dim), jnp.float32)
    cond = jax.random.normal(kc, (B, cond_dim), jnp.float32)
    params = make_params(kp, latent_dim, cond_dim, hidden_dim, output_dim)

    out = decoder_forward(z, cond, params, seq_len)
    out = jax.block_until_ready(out)

    ref = jax.block_until_ready(decoder_ref(z, cond, params, seq_len))
    assert out.shape == (B, seq_len, output_dim), out.shape
    assert np.allclose(np.asarray(out), np.asarray(ref), atol=1e-2, rtol=1e-2)

    print("KERNEL_OK")
</pallas_src>

<mosaic_0001>
module attributes {stable_mosaic.version = 11 : i64} {
  func.func @decoder_kernel(%arg0: memref<8x16xf32, #tpu.memory_space<vmem>>, %arg1: memref<16x16xf32, #tpu.memory_space<vmem>>, %arg2: memref<1x16xf32, #tpu.memory_space<vmem>>, %arg3: memref<16x128xf32, #tpu.memory_space<vmem>>, %arg4: memref<32x128xf32, #tpu.memory_space<vmem>>, %arg5: memref<1x128xf32, #tpu.memory_space<vmem>>, %arg6: memref<32x16xf32, #tpu.memory_space<vmem>>, %arg7: memref<1x128xf32, #tpu.memory_space<vmem>>, %arg8: memref<8x128xf32, #tpu.memory_space<vmem>>) attributes {dimension_semantics = [], scalar_prefetch = 0 : i64, scratch_operands = 0 : i64, tpu.core_type = #tpu.core_type<tc>} {
    %c0 = arith.constant 0 : index
    %c0_0 = arith.constant 0 : index
    %0 = vector.load %arg0[%c0, %c0_0] : memref<8x16xf32, #tpu.memory_space<vmem>>, vector<8x16xf32>
    %c0_1 = arith.constant 0 : index
    %c0_2 = arith.constant 0 : index
    %1 = vector.load %arg1[%c0_1, %c0_2] : memref<16x16xf32, #tpu.memory_space<vmem>>, vector<16x16xf32>
    %cst = arith.constant dense<0.000000e+00> : vector<8x16xf32>
    %2 = tpu.matmul %0, %1, %cst {dimension_numbers = #tpu.dot_dimension_numbers<[1], [0], [0], [1], [0, 0, 1, 1], [], []>} : vector<8x16xf32>, vector<16x16xf32>, vector<8x16xf32> -> vector<8x16xf32>
    %c0_3 = arith.constant 0 : index
    %c0_4 = arith.constant 0 : index
    %3 = vector.load %arg2[%c0_3, %c0_4] : memref<1x16xf32, #tpu.memory_space<vmem>>, vector<1x16xf32>
    %4 = vector.broadcast %3 : vector<1x16xf32> to vector<8x16xf32>
    %5 = arith.addf %2, %4 : vector<8x16xf32>
    %cst_5 = arith.constant 0.000000e+00 : f32
    %6 = vector.broadcast %cst_5 : f32 to vector<8x16xf32>
    %7 = arith.maximumf %5, %6 : vector<8x16xf32>
    %c0_6 = arith.constant 0 : index
    %c0_7 = arith.constant 0 : index
    %8 = vector.load %arg3[%c0_6, %c0_7] : memref<16x128xf32, #tpu.memory_space<vmem>>, vector<16x128xf32>
    %cst_8 = arith.constant dense<0.000000e+00> : vector<8x128xf32>
    %9 = tpu.matmul %7, %8, %cst_8 {dimension_numbers = #tpu.dot_dimension_numbers<[1], [0], [0], [1], [0, 0, 1, 1], [], []>} : vector<8x16xf32>, vector<16x128xf32>, vector<8x128xf32> -> vector<8x128xf32>
    %c0_9 = arith.constant 0 : index
    %c0_10 = arith.constant 0 : index
    %10 = vector.load %arg5[%c0_9, %c0_10] : memref<1x128xf32, #tpu.memory_space<vmem>>, vector<1x128xf32>
    %11 = vector.broadcast %10 : vector<1x128xf32> to vector<8x128xf32>
    %12 = arith.addf %9, %11 : vector<8x128xf32>
    %c0_11 = arith.constant 0 : index
    %c0_12 = arith.constant 0 : index
    %13 = vector.load %arg4[%c0_11, %c0_12] : memref<32x128xf32, #tpu.memory_space<vmem>>, vector<32x128xf32>
    %c0_13 = arith.constant 0 : index
    %c0_14 = arith.constant 0 : index
    %14 = vector.load %arg6[%c0_13, %c0_14] : memref<32x16xf32, #tpu.memory_space<vmem>>, vector<32x16xf32>
    %cst_15 = arith.constant 0.000000e+00 : f32
    %15 = vector.broadcast %cst_15 : f32 to vector<8x32xf32>
    %cst_16 = arith.constant 0.000000e+00 : f32
    %16 = vector.broadcast %cst_16 : f32 to vector<8x32xf32>
    %cst_17 = arith.constant dense<0.000000e+00> : vector<8x128xf32>
    %17 = tpu.matmul %15, %13, %cst_17 {dimension_numbers = #tpu.dot_dimension_numbers<[1], [0], [0], [1], [0, 0, 1, 1], [], []>} : vector<8x32xf32>, vector<32x128xf32>, vector<8x128xf32> -> vector<8x128xf32>
    %18 = arith.addf %12, %17 : vector<8x128xf32>
    %19 = arith.negf %18 : vector<8x128xf32>
    %20 = math.exp %19 : vector<8x128xf32>
    %cst_18 = arith.constant 1.000000e+00 : f32
    %21 = vector.broadcast %cst_18 : f32 to vector<8x128xf32>
    %22 = arith.addf %21, %20 : vector<8x128xf32>
    %23 = arith.divf %21, %22 : vector<8x128xf32>
    %24 = vector.extract_strided_slice %23 {offsets = [0, 0], sizes = [8, 32], strides = [1, 1]} : vector<8x128xf32> to vector<8x32xf32>
    %25 = vector.extract_strided_slice %23 {offsets = [0, 32], sizes = [8, 32], strides = [1, 1]} : vector<8x128xf32> to vector<8x32xf32>
    %26 = vector.extract_strided_slice %23 {offsets = [0, 64], sizes = [8, 32], strides = [1, 1]} : vector<8x128xf32> to vector<8x32xf32>
    %cst_19 = arith.constant 2.000000e+00 : f32
    %27 = vector.broadcast %cst_19 : f32 to vector<8x32xf32>
    %28 = arith.mulf %27, %26 : vector<8x32xf32>
    %cst_20 = arith.constant 1.000000e+00 : f32
    %29 = vector.broadcast %cst_20 : f32 to vector<8x32xf32>
    %30 = arith.subf %28, %29 : vector<8x32xf32>
    %31 = vector.extract_strided_slice %23 {offsets = [0, 96], sizes = [8, 32], strides = [1, 1]} : vector<8x128xf32> to vector<8x32xf32>
    %32 = arith.mulf %25, %16 : vector<8x32xf32>
    %33 = arith.mulf %24, %30 : vector<8x32xf32>
    %34 = arith.addf %32, %33 : vector<8x32xf32>
    %35 = math.tanh %34 : vector<8x32xf32>
    %36 = arith.mulf %31, %35 : vector<8x32xf32>
    %cst_21 = arith.constant dense<0.000000e+00> : vector<8x16xf32>
    %37 = tpu.matmul %36, %14, %cst_21 {dimension_numbers = #tpu.dot_dimension_numbers<[1], [0], [0], [1], [0, 0, 1, 1], [], []>} : vector<8x32xf32>, vector<32x16xf32>, vector<8x16xf32> -> vector<8x16xf32>
    %c0_22 = arith.constant 0 : index
    %c0_23 = arith.constant 0 : index
    %38 = vector.load %arg8[%c0_22, %c0_23] : memref<8x128xf32, #tpu.memory_space<vmem>>, vector<8x16xf32>
    tpu.vector_store %arg8[%c0_22, %c0_23], %37 {strides = array<i32>} : memref<8x128xf32, #tpu.memory_space<vmem>>, vector<8x16xf32>,
    %cst_24 = arith.constant dense<0.000000e+00> : vector<8x128xf32>
    %39 = tpu.matmul %36, %13, %cst_24 {dimension_numbers = #tpu.dot_dimension_numbers<[1], [0], [0], [1], [0, 0, 1, 1], [], []>} : vector<8x32xf32>, vector<32x128xf32>, vector<8x128xf32> -> vector<8x128xf32>
    %40 = arith.addf %12, %39 : vector<8x128xf32>
    %41 = arith.negf %40 : vector<8x128xf32>
    %42 = math.exp %41 : vector<8x128xf32>
    %cst_25 = arith.constant 1.000000e+00 : f32
    %43 = vector.broadcast %cst_25 : f32 to vector<8x128xf32>
    %44 = arith.addf %43, %42 : vector<8x128xf32>
    %45 = arith.divf %43, %44 : vector<8x128xf32>
    %46 = vector.extract_strided_slice %45 {offsets = [0, 0], sizes = [8, 32], strides = [1, 1]} : vector<8x128xf32> to vector<8x32xf32>
    %47 = vector.extract_strided_slice %45 {offsets = [0, 32], sizes = [8, 32], strides = [1, 1]} : vector<8x128xf32> to vector<8x32xf32>
    %48 = vector.extract_strided_slice %45 {offsets = [0, 64], sizes = [8, 32], strides = [1, 1]} : vector<8x128xf32> to vector<8x32xf32>
    %cst_26 = arith.constant 2.000000e+00 : f32
    %49 = vector.broadcast %cst_26 : f32 to vector<8x32xf32>
    %50 = arith.mulf %49, %48 : vector<8x32xf32>
    %cst_27 = arith.constant 1.000000e+00 : f32
    %51 = vector.broadcast %cst_27 : f32 to vector<8x32xf32>
    %52 = arith.subf %50, %51 : vector<8x32xf32>
    %53 = vector.extract_strided_slice %45 {offsets = [0, 96], sizes = [8, 32], strides = [1, 1]} : vector<8x128xf32> to vector<8x32xf32>
    %54 = arith.mulf %47, %34 : vector<8x32xf32>
    %55 = arith.mulf %46, %52 : vector<8x32xf32>
    %56 = arith.addf %54, %55 : vector<8x32xf32>
    %57 = math.tanh %56 : vector<8x32xf32>
    %58 = arith.mulf %53, %57 : vector<8x32xf32>
    %cst_28 = arith.constant dense<0.000000e+00> : vector<8x16xf32>
    %59 = tpu.matmul %58, %14, %cst_28 {dimension_numbers = #tpu.dot_dimension_numbers<[1], [0], [0], [1], [0, 0, 1, 1], [], []>} : vector<8x32xf32>, vector<32x16xf32>, vector<8x16xf32> -> vector<8x16xf32>
    %c0_29 = arith.constant 0 : index
    %c16 = arith.constant 16 : index
    %60 = vector.load %arg8[%c0_29, %c16] : memref<8x128xf32, #tpu.memory_space<vmem>>, vector<8x16xf32>
    tpu.vector_store %arg8[%c0_29, %c16], %59 {strides = array<i32>} : memref<8x128xf32, #tpu.memory_space<vmem>>, vector<8x16xf32>,
    %cst_30 = arith.constant dense<0.000000e+00> : vector<8x128xf32>
    %61 = tpu.matmul %58, %13, %cst_30 {dimension_numbers = #tpu.dot_dimension_numbers<[1], [0], [0], [1], [0, 0, 1, 1], [], []>} : vector<8x32xf32>, vector<32x128xf32>, vector<8x128xf32> -> vector<8x128xf32>
    %62 = arith.addf %12, %61 : vector<8x128xf32>
    %63 = arith.negf %62 : vector<8x128xf32>
    %64 = math.exp %63 : vector<8x128xf32>
    %cst_31 = arith.constant 1.000000e+00 : f32
    %65 = vector.broadcast %cst_31 : f32 to vector<8x128xf32>
    %66 = arith.addf %65, %64 : vector<8x128xf32>
    %67 = arith.divf %65, %66 : vector<8x128xf32>
    %68 = vector.extract_strided_slice %67 {offsets = [0, 0], sizes = [8, 32], strides = [1, 1]} : vector<8x128xf32> to vector<8x32xf32>
    %69 = vector.extract_strided_slice %67 {offsets = [0, 32], sizes = [8, 32], strides = [1, 1]} : vector<8x128xf32> to vector<8x32xf32>
    %70 = vector.extract_strided_slice %67 {offsets = [0, 64], sizes = [8, 32], strides = [1, 1]} : vector<8x128xf32> to vector<8x32xf32>
    %cst_32 = arith.constant 2.000000e+00 : f32
    %71 = vector.broadcast %cst_32 : f32 to vector<8x32xf32>
    %72 = arith.mulf %71, %70 : vector<8x32xf32>
    %cst_33 = arith.constant 1.000000e+00 : f32
    %73 = vector.broadcast %cst_33 : f32 to vector<8x32xf32>
    %74 = arith.subf %72, %73 : vector<8x32xf32>
    %75 = vector.extract_strided_slice %67 {offsets = [0, 96], sizes = [8, 32], strides = [1, 1]} : vector<8x128xf32> to vector<8x32xf32>
    %76 = arith.mulf %69, %56 : vector<8x32xf32>
    %77 = arith.mulf %68, %74 : vector<8x32xf32>
    %78 = arith.addf %76, %77 : vector<8x32xf32>
    %79 = math.tanh %78 : vector<8x32xf32>
    %80 = arith.mulf %75, %79 : vector<8x32xf32>
    %cst_34 = arith.constant dense<0.000000e+00> : vector<8x16xf32>
    %81 = tpu.matmul %80, %14, %cst_34 {dimension_numbers = #tpu.dot_dimension_numbers<[1], [0], [0], [1], [0, 0, 1, 1], [], []>} : vector<8x32xf32>, vector<32x16xf32>, vector<8x16xf32> -> vector<8x16xf32>
    %c0_35 = arith.constant 0 : index
    %c32 = arith.constant 32 : index
    %82 = vector.load %arg8[%c0_35, %c32] : memref<8x128xf32, #tpu.memory_space<vmem>>, vector<8x16xf32>
    tpu.vector_store %arg8[%c0_35, %c32], %81 {strides = array<i32>} : memref<8x128xf32, #tpu.memory_space<vmem>>, vector<8x16xf32>,
    %cst_36 = arith.constant dense<0.000000e+00> : vector<8x128xf32>
    %83 = tpu.matmul %80, %13, %cst_36 {dimension_numbers = #tpu.dot_dimension_numbers<[1], [0], [0], [1], [0, 0, 1, 1], [], []>} : vector<8x32xf32>, vector<32x128xf32>, vector<8x128xf32> -> vector<8x128xf32>
    %84 = arith.addf %12, %83 : vector<8x128xf32>
    %85 = arith.negf %84 : vector<8x128xf32>
    %86 = math.exp %85 : vector<8x128xf32>
    %cst_37 = arith.constant 1.000000e+00 : f32
    %87 = vector.broadcast %cst_37 : f32 to vector<8x128xf32>
    %88 = arith.addf %87, %86 : vector<8x128xf32>
    %89 = arith.divf %87, %88 : vector<8x128xf32>
    %90 = vector.extract_strided_slice %89 {offsets = [0, 0], sizes = [8, 32], strides = [1, 1]} : vector<8x128xf32> to vector<8x32xf32>
    %91 = vector.extract_strided_slice %89 {offsets = [0, 32], sizes = [8, 32], strides = [1, 1]} : vector<8x128xf32> to vector<8x32xf32>
    %92 = vector.extract_strided_slice %89 {offsets = [0, 64], sizes = [8, 32], strides = [1, 1]} : vector<8x128xf32> to vector<8x32xf32>
    %cst_38 = arith.constant 2.000000e+00 : f32
    %93 = vector.broadcast %cst_38 : f32 to vector<8x32xf32>
    %94 = arith.mulf %93, %92 : vector<8x32xf32>
    %cst_39 = arith.constant 1.000000e+00 : f32
    %95 = vector.broadcast %cst_39 : f32 to vector<8x32xf32>
    %96 = arith.subf %94, %95 : vector<8x32xf32>
    %97 = vector.extract_strided_slice %89 {offsets = [0, 96], sizes = [8, 32], strides = [1, 1]} : vector<8x128xf32> to vector<8x32xf32>
    %98 = arith.mulf %91, %78 : vector<8x32xf32>
    %99 = arith.mulf %90, %96 : vector<8x32xf32>
    %100 = arith.addf %98, %99 : vector<8x32xf32>
    %101 = math.tanh %100 : vector<8x32xf32>
    %102 = arith.mulf %97, %101 : vector<8x32xf32>
    %cst_40 = arith.constant dense<0.000000e+00> : vector<8x16xf32>
    %103 = tpu.matmul %102, %14, %cst_40 {dimension_numbers = #tpu.dot_dimension_numbers<[1], [0], [0], [1], [0, 0, 1, 1], [], []>} : vector<8x32xf32>, vector<32x16xf32>, vector<8x16xf32> -> vector<8x16xf32>
    %c0_41 = arith.constant 0 : index
    %c48 = arith.constant 48 : index
    %104 = vector.load %arg8[%c0_41, %c48] : memref<8x128xf32, #tpu.memory_space<vmem>>, vector<8x16xf32>
    tpu.vector_store %arg8[%c0_41, %c48], %103 {strides = array<i32>} : memref<8x128xf32, #tpu.memory_space<vmem>>, vector<8x16xf32>,
    %cst_42 = arith.constant dense<0.000000e+00> : vector<8x128xf32>
    %105 = tpu.matmul %102, %13, %cst_42 {dimension_numbers = #tpu.dot_dimension_numbers<[1], [0], [0], [1], [0, 0, 1, 1], [], []>} : vector<8x32xf32>, vector<32x128xf32>, vector<8x128xf32> -> vector<8x128xf32>
    %106 = arith.addf %12, %105 : vector<8x128xf32>
    %107 = arith.negf %106 : vector<8x128xf32>
    %108 = math.exp %107 : vector<8x128xf32>
    %cst_43 = arith.constant 1.000000e+00 : f32
    %109 = vector.broadcast %cst_43 : f32 to vector<8x128xf32>
    %110 = arith.addf %109, %108 : vector<8x128xf32>
    %111 = arith.divf %109, %110 : vector<8x128xf32>
    %112 = vector.extract_strided_slice %111 {offsets = [0, 0], sizes = [8, 32], strides = [1, 1]} : vector<8x128xf32> to vector<8x32xf32>
    %113 = vector.extract_strided_slice %111 {offsets = [0, 32], sizes = [8, 32], strides = [1, 1]} : vector<8x128xf32> to vector<8x32xf32>
    %114 = vector.extract_strided_slice %111 {offsets = [0, 64], sizes = [8, 32], strides = [1, 1]} : vector<8x128xf32> to vector<8x32xf32>
    %cst_44 = arith.constant 2.000000e+00 : f32
    %115 = vector.broadcast %cst_44 : f32 to vector<8x32xf32>
    %116 = arith.mulf %115, %114 : vector<8x32xf32>
    %cst_45 = arith.constant 1.000000e+00 : f32
    %117 = vector.broadcast %cst_45 : f32 to vector<8x32xf32>
    %118 = arith.subf %116, %117 : vector<8x32xf32>
    %119 = vector.extract_strided_slice %111 {offsets = [0, 96], sizes = [8, 32], strides = [1, 1]} : vector<8x128xf32> to vector<8x32xf32>
    %120 = arith.mulf %113, %100 : vector<8x32xf32>
    %121 = arith.mulf %112, %118 : vector<8x32xf32>
    %122 = arith.addf %120, %121 : vector<8x32xf32>
    %123 = math.tanh %122 : vector<8x32xf32>
    %124 = arith.mulf %119, %123 : vector<8x32xf32>
    %cst_46 = arith.constant dense<0.000000e+00> : vector<8x16xf32>
    %125 = tpu.matmul %124, %14, %cst_46 {dimension_numbers = #tpu.dot_dimension_numbers<[1], [0], [0], [1], [0, 0, 1, 1], [], []>} : vector<8x32xf32>, vector<32x16xf32>, vector<8x16xf32> -> vector<8x16xf32>
    %c0_47 = arith.constant 0 : index
    %c64 = arith.constant 64 : index
    %126 = vector.load %arg8[%c0_47, %c64] : memref<8x128xf32, #tpu.memory_space<vmem>>, vector<8x16xf32>
    tpu.vector_store %arg8[%c0_47, %c64], %125 {strides = array<i32>} : memref<8x128xf32, #tpu.memory_space<vmem>>, vector<8x16xf32>,
    %cst_48 = arith.constant dense<0.000000e+00> : vector<8x128xf32>
    %127 = tpu.matmul %124, %13, %cst_48 {dimension_numbers = #tpu.dot_dimension_numbers<[1], [0], [0], [1], [0, 0, 1, 1], [], []>} : vector<8x32xf32>, vector<32x128xf32>, vector<8x128xf32> -> vector<8x128xf32>
    %128 = arith.addf %12, %127 : vector<8x128xf32>
    %129 = arith.negf %128 : vector<8x128xf32>
    %130 = math.exp %129 : vector<8x128xf32>
    %cst_49 = arith.constant 1.000000e+00 : f32
    %131 = vector.broadcast %cst_49 : f32 to vector<8x128xf32>
    %132 = arith.addf %131, %130 : vector<8x128xf32>
    %133 = arith.divf %131, %132 : vector<8x128xf32>
    %134 = vector.extract_strided_slice %133 {offsets = [0, 0], sizes = [8, 32], strides = [1, 1]} : vector<8x128xf32> to vector<8x32xf32>
    %135 = vector.extract_strided_slice %133 {offsets = [0, 32], sizes = [8, 32], strides = [1, 1]} : vector<8x128xf32> to vector<8x32xf32>
    %136 = vector.extract_strided_slice %133 {offsets = [0, 64], sizes = [8, 32], strides = [1, 1]} : vector<8x128xf32> to vector<8x32xf32>
    %cst_50 = arith.constant 2.000000e+00 : f32
    %137 = vector.broadcast %cst_50 : f32 to vector<8x32xf32>
    %138 = arith.mulf %137, %136 : vector<8x32xf32>
    %cst_51 = arith.constant 1.000000e+00 : f32
    %139 = vector.broadcast %cst_51 : f32 to vector<8x32xf32>
    %140 = arith.subf %138, %139 : vector<8x32xf32>
    %141 = vector.extract_strided_slice %133 {offsets = [0, 96], sizes = [8, 32], strides = [1, 1]} : vector<8x128xf32> to vector<8x32xf32>
    %142 = arith.mulf %135, %122 : vector<8x32xf32>
    %143 = arith.mulf %134, %140 : vector<8x32xf32>
    %144 = arith.addf %142, %143 : vector<8x32xf32>
    %145 = math.tanh %144 : vector<8x32xf32>
    %146 = arith.mulf %141, %145 : vector<8x32xf32>
    %cst_52 = arith.constant dense<0.000000e+00> : vector<8x16xf32>
    %147 = tpu.matmul %146, %14, %cst_52 {dimension_numbers = #tpu.dot_dimension_numbers<[1], [0], [0], [1], [0, 0, 1, 1], [], []>} : vector<8x32xf32>, vector<32x16xf32>, vector<8x16xf32> -> vector<8x16xf32>
    %c0_53 = arith.constant 0 : index
    %c80 = arith.constant 80 : index
    %148 = vector.load %arg8[%c0_53, %c80] : memref<8x128xf32, #tpu.memory_space<vmem>>, vector<8x16xf32>
    tpu.vector_store %arg8[%c0_53, %c80], %147 {strides = array<i32>} : memref<8x128xf32, #tpu.memory_space<vmem>>, vector<8x16xf32>,
    %cst_54 = arith.constant dense<0.000000e+00> : vector<8x128xf32>
    %149 = tpu.matmul %146, %13, %cst_54 {dimension_numbers = #tpu.dot_dimension_numbers<[1], [0], [0], [1], [0, 0, 1, 1], [], []>} : vector<8x32xf32>, vector<32x128xf32>, vector<8x128xf32> -> vector<8x128xf32>
    %150 = arith.addf %12, %149 : vector<8x128xf32>
    %151 = arith.negf %150 : vector<8x128xf32>
    %152 = math.exp %151 : vector<8x128xf32>
    %cst_55 = arith.constant 1.000000e+00 : f32
    %153 = vector.broadcast %cst_55 : f32 to vector<8x128xf32>
    %154 = arith.addf %153, %152 : vector<8x128xf32>
    %155 = arith.divf %153, %154 : vector<8x128xf32>
    %156 = vector.extract_strided_slice %155 {offsets = [0, 0], sizes = [8, 32], strides = [1, 1]} : vector<8x128xf32> to vector<8x32xf32>
    %157 = vector.extract_strided_slice %155 {offsets = [0, 32], sizes = [8, 32], strides = [1, 1]} : vector<8x128xf32> to vector<8x32xf32>
    %158 = vector.extract_strided_slice %155 {offsets = [0, 64], sizes = [8, 32], strides = [1, 1]} : vector<8x128xf32> to vector<8x32xf32>
    %cst_56 = arith.constant 2.000000e+00 : f32
    %159 = vector.broadcast %cst_56 : f32 to vector<8x32xf32>
    %160 = arith.mulf %159, %158 : vector<8x32xf32>
    %cst_57 = arith.constant 1.000000e+00 : f32
    %161 = vector.broadcast %cst_57 : f32 to vector<8x32xf32>
    %162 = arith.subf %160, %161 : vector<8x32xf32>
    %163 = vector.extract_strided_slice %155 {offsets = [0, 96], sizes = [8, 32], strides = [1, 1]} : vector<8x128xf32> to vector<8x32xf32>
    %164 = arith.mulf %157, %144 : vector<8x32xf32>
    %165 = arith.mulf %156, %162 : vector<8x32xf32>
    %166 = arith.addf %164, %165 : vector<8x32xf32>
    %167 = math.tanh %166 : vector<8x32xf32>
    %168 = arith.mulf %163, %167 : vector<8x32xf32>
    %cst_58 = arith.constant dense<0.000000e+00> : vector<8x16xf32>
    %169 = tpu.matmul %168, %14, %cst_58 {dimension_numbers = #tpu.dot_dimension_numbers<[1], [0], [0], [1], [0, 0, 1, 1], [], []>} : vector<8x32xf32>, vector<32x16xf32>, vector<8x16xf32> -> vector<8x16xf32>
    %c0_59 = arith.constant 0 : index
    %c96 = arith.constant 96 : index
    %170 = vector.load %arg8[%c0_59, %c96] : memref<8x128xf32, #tpu.memory_space<vmem>>, vector<8x16xf32>
    tpu.vector_store %arg8[%c0_59, %c96], %169 {strides = array<i32>} : memref<8x128xf32, #tpu.memory_space<vmem>>, vector<8x16xf32>,
    %cst_60 = arith.constant dense<0.000000e+00> : vector<8x128xf32>
    %171 = tpu.matmul %168, %13, %cst_60 {dimension_numbers = #tpu.dot_dimension_numbers<[1], [0], [0], [1], [0, 0, 1, 1], [], []>} : vector<8x32xf32>, vector<32x128xf32>, vector<8x128xf32> -> vector<8x128xf32>
    %172 = arith.addf %12, %171 : vector<8x128xf32>
    %173 = arith.negf %172 : vector<8x128xf32>
    %174 = math.exp %173 : vector<8x128xf32>
    %cst_61 = arith.constant 1.000000e+00 : f32
    %175 = vector.broadcast %cst_61 : f32 to vector<8x128xf32>
    %176 = arith.addf %175, %174 : vector<8x128xf32>
    %177 = arith.divf %175, %176 : vector<8x128xf32>
    %178 = vector.extract_strided_slice %177 {offsets = [0, 0], sizes = [8, 32], strides = [1, 1]} : vector<8x128xf32> to vector<8x32xf32>
    %179 = vector.extract_strided_slice %177 {offsets = [0, 32], sizes = [8, 32], strides = [1, 1]} : vector<8x128xf32> to vector<8x32xf32>
    %180 = vector.extract_strided_slice %177 {offsets = [0, 64], sizes = [8, 32], strides = [1, 1]} : vector<8x128xf32> to vector<8x32xf32>
    %cst_62 = arith.constant 2.000000e+00 : f32
    %181 = vector.broadcast %cst_62 : f32 to vector<8x32xf32>
    %182 = arith.mulf %181, %180 : vector<8x32xf32>
    %cst_63 = arith.constant 1.000000e+00 : f32
    %183 = vector.broadcast %cst_63 : f32 to vector<8x32xf32>
    %184 = arith.subf %182, %183 : vector<8x32xf32>
    %185 = vector.extract_strided_slice %177 {offsets = [0, 96], sizes = [8, 32], strides = [1, 1]} : vector<8x128xf32> to vector<8x32xf32>
    %186 = arith.mulf %179, %166 : vector<8x32xf32>
    %187 = arith.mulf %178, %184 : vector<8x32xf32>
    %188 = arith.addf %186, %187 : vector<8x32xf32>
    %189 = math.tanh %188 : vector<8x32xf32>
    %190 = arith.mulf %185, %189 : vector<8x32xf32>
    %cst_64 = arith.constant dense<0.000000e+00> : vector<8x16xf32>
    %191 = tpu.matmul %190, %14, %cst_64 {dimension_numbers = #tpu.dot_dimension_numbers<[1], [0], [0], [1], [0, 0, 1, 1], [], []>} : vector<8x32xf32>, vector<32x16xf32>, vector<8x16xf32> -> vector<8x16xf32>
    %c0_65 = arith.constant 0 : index
    %c112 = arith.constant 112 : index
    %192 = vector.load %arg8[%c0_65, %c112] : memref<8x128xf32, #tpu.memory_space<vmem>>, vector<8x16xf32>
    tpu.vector_store %arg8[%c0_65, %c112], %191 {strides = array<i32>} : memref<8x128xf32, #tpu.memory_space<vmem>>, vector<8x16xf32>,
    %c0_66 = arith.constant 0 : index
    %c0_67 = arith.constant 0 : index
    %193 = vector.load %arg8[%c0_66, %c0_67] : memref<8x128xf32, #tpu.memory_space<vmem>>, vector<8x128xf32>
    %c0_68 = arith.constant 0 : index
    %c0_69 = arith.constant 0 : index
    %194 = vector.load %arg7[%c0_68, %c0_69] : memref<1x128xf32, #tpu.memory_space<vmem>>, vector<1x128xf32>
    %195 = vector.broadcast %194 : vector<1x128xf32> to vector<8x128xf32>
    %196 = arith.addf %193, %195 : vector<8x128xf32>
    %197 = math.tanh %196 : vector<8x128xf32>
    %c0_70 = arith.constant 0 : index
    %c0_71 = arith.constant 0 : index
    %198 = vector.load %arg8[%c0_70, %c0_71] : memref<8x128xf32, #tpu.memory_space<vmem>>, vector<8x128xf32>
    tpu.vector_store %arg8[%c0_70, %c0_71], %197 {strides = array<i32>} : memref<8x128xf32, #tpu.memory_space<vmem>>, vector<8x128xf32>,
    return
  }
}

</mosaic_0001>

<bundles_post_ra>
// kernel: tpu_custom_call.1
= control target key start
LH: loop header
LB: loop body
LE: loop exit
PB: predicated region body
PF: predicated region fallthrough
CT: control target
= control target key end

     0   :  { %13 = vsyncpa [#allocation3], 0  ;;  %s1303_s0 = inlined_call_operand.hbm [shape: f32[8,16], index: 0, kind: input, shape index: {}]   ;;  %s1304_s1 = inlined_call_operand.vmem [shape: f32[16,16], index: 1, kind: input, shape index: {}]   ;;  %s1305_s2 = inlined_call_operand.vmem [shape: f32[1,16], index: 2, kind: input, shape index: {}]   ;;  %s1306_s3 = inlined_call_operand.hbm [shape: f32[16,128], index: 3, kind: input, shape index: {}]   ;;  %s1307_s4 = inlined_call_operand.vmem [shape: f32[32,128], index: 4, kind: input, shape index: {}]   ;;  %s1308_s5 = inlined_call_operand.vmem [shape: f32[1,128], index: 5, kind: input, shape index: {}]   ;;  %s1309_s6 = inlined_call_operand.vmem [shape: f32[32,16], index: 6, kind: input, shape index: {}]   ;;  %s1310_s7 = inlined_call_operand.vmem [shape: f32[1,128], index: 7, kind: input, shape index: {}]   ;;  %s1311_s8 = inlined_call_operand.hbm [shape: f32[8,128], index: 8, kind: output, shape index: {}]  }
   0x1   :  { %14 = vsyncpa [#allocation6], 0 }
   0x2   :  { %15 = vsyncpa [#allocation4], 0  ;;  %s21_s29 = sshll.u32 %s1303_s0, 4  ;;  %s1051_s30 = smov [#allocation2]   ;;  %s22_s29 = int_to_ptr.hbm [resolvable:$true] %s21_s29 }
   0x3   :  { %s23_s9 = sshll.u32 %s1051_s30, 4  ;;  %s35_s12 = sshll.u32 %s1306_s3, 4  ;;  %s24_s9 = int_to_ptr.vmem [resolvable:$true] %s23_s9  ;;  %s36_s12 = int_to_ptr.hbm [resolvable:$true] %s35_s12 }
   0x4   :  { %26 = dma.hbm_to_vmem [thread:$0]  %s22_s29, 128, %s24_s9, [#allocation3]  }
   0x5   :  { %s1052_s13 = smov [#allocation5]   ;;  %s1053_s15 = smov 128  }
   0x6   :  { %s37_s14 = sshll.u32 %s1052_s13, 4  ;;  %s1054_s16 = smov 8   ;;  %s38_s14 = int_to_ptr.vmem [resolvable:$true] %s37_s14 }
   0x7   :  { %43 = dma.hbm_to_vmem [thread:$0]  %s36_s12, 256, %s38_s14, [#allocation6], %s1053_s15, %s1053_s15, %s1054_s16  }
   0x8   :  { %1045 = dma.done.wait [#allocation3], 128  }
   0x9   :  { %1046 = vsyncadd [#allocation3], 4294967168 }
   0xa   :  { %1047 = dma.done.wait [#allocation6], 256  }
   0xb   :  { %1048 = vsyncadd [#allocation6], 4294967040  ;;  %v62_v0 = vld [vmem:[%s1304_s1 + $0x8] sm:$0xff]  ;;  %v61_v1 = vld [vmem:[%s1304_s1] sm:$0xff]  ;;  %vm67_vm0 = vcmask 130048   ;;  %v1055_v7 = vmov 0.0  }
   0xc   :  { %85 = vmatpush.msra.mxu0 %v62_v0  ;;  %v60_v2 = vld [vmem:[#allocation2] sm:$0xff]  ;;  %v1124_v3 = vld [vmem:[%s1307_s4 + $0x18] sm:$0xff]  ;;  %v1129_v4 = vld [vmem:[%s1307_s4 + $0x10] sm:$0xff]  ;;  %vm129_vm5 = vcmask 261120   ;;  %s1059_s15 = smov 80   ;;  %s1060_s16 = smov 48  }
   0xd   :  { %145 = vmatpush.msra.mxu2 %v1124_v3  ;;  %v1135_v5 = vld [vmem:[%s1307_s4 + $0x8] sm:$0xff]  ;;  %v1146_v6 = vld [vmem:[%s1307_s4] sm:$0xff]  ;;  %v93_v8 = vld [vmem:[#allocation5 + $0x8] sm:$0xff]  ;;  %s1061_s0 = smov 96   ;;  %s1062_s17 = smov 112  }
   0xe   :  { %86 = vmatpush.msra.mxu0 %v61_v1  ;;  %115 = vmatpush.msra.mxu1 %v93_v8  ;;  %v92_v9 = vld [vmem:[#allocation5] sm:$0xff]  ;;  %v920_v10 = vld [vmem:[%s1305_s2] ss:$0 sm:$0xff]  ;;  %s1056_s2 = smov 64   ;;  %v1181_v40 = vld [vmem:[%s1309_s6 + $0x18] sm:$0xff]  ;;  %s1063_s3 = smov [#allocation7]  }
   0xf   :  { %874 = vmatmul.msk.f32.vlgmr.msra.gmra.mxu0 %vm67_vm0, %v60_v2  ;;  %146 = vmatpush.msra.mxu2 %v1129_v4  ;;  %v921_v14 = vld [vmem:[%s1308_s5] ss:$0 sm:$0xff]  ;;  %s1057_s5 = smov 32   ;;  %v1186_v41 = vld [vmem:[%s1309_s6 + $0x10] sm:$0xff]  ;;  %v1193_v42 = vld [vmem:[%s1309_s6 + $0x8] sm:$0xff]  ;;  %s861_s20 = sshll.u32 %s1063_s3, 4  ;;  %s862_s20 = int_to_ptr.vmem [resolvable:$true] %s861_s20 }
  0x10   :  { %230 = vmatpush.msrb.mxu0 %v1124_v3  ;;  %116 = vmatpush.msra.mxu1 %v92_v9  ;;  %v1200_v43 = vld [vmem:[%s1309_s6] sm:$0xff]  ;;  %s1058_s6 = smov 16   ;;  %s863_s23 = sshll.u32 %s1311_s8, 4  ;;  %s864_s23 = int_to_ptr.hbm [resolvable:$true] %s863_s23 }
  0x11   :  { %147 = vmatpush.msra.mxu2 %v1135_v5  ;;  %209 = vmatpush.msra.mxu3 %v1181_v40 }
  0x12   :  { %231 = vmatpush.msrb.mxu0 %v1129_v4  ;;  %294 = vmatpush.msrb.mxu1 %v1181_v40 }
  0x13   :  { %148 = vmatpush.msra.mxu2 %v1146_v6  ;;  %210 = vmatpush.msra.mxu3 %v1186_v41 }
  0x14   :  { %232 = vmatpush.msrb.mxu0 %v1135_v5  ;;  %149 = vmatmul.f32.vlgmr.msra.gmra.mxu2 %v1055_v7 }
  0x15   :  { %320 = vmatpush.msrb.mxu2 %v1124_v3  ;;  %295 = vmatpush.msrb.mxu1 %v1186_v41 }
  0x16   :  { %233 = vmatpush.msrb.mxu0 %v1146_v6  ;;  %211 = vmatpush.msra.mxu3 %v1193_v42 }
  0x17   :  { %321 = vmatpush.msrb.mxu2 %v1129_v4  ;;  %296 = vmatpush.msrb.mxu1 %v1193_v42 }
  0x18   :  { %410 = vmatpush.msra.mxu0 %v1124_v3  ;;  %212 = vmatpush.msra.mxu3 %v1200_v43 }
  0x19   :  { %322 = vmatpush.msrb.mxu2 %v1135_v5  ;;  %297 = vmatpush.msrb.mxu1 %v1200_v43 }
  0x1a   :  { %411 = vmatpush.msra.mxu0 %v1129_v4  ;;  %384 = vmatpush.msrb.mxu3 %v1181_v40 }
  0x1b   :  { %323 = vmatpush.msrb.mxu2 %v1146_v6 }
  0x1c   :  { %412 = vmatpush.msra.mxu0 %v1135_v5  ;;  %385 = vmatpush.msrb.mxu3 %v1186_v41 }
  0x1d   :  { %500 = vmatpush.msra.mxu2 %v1124_v3 }
  0x1e   :  { %413 = vmatpush.msra.mxu0 %v1146_v6  ;;  %386 = vmatpush.msrb.mxu3 %v1193_v42 }
  0x1f   :  { %501 = vmatpush.msra.mxu2 %v1129_v4 }
  0x20   :  { %387 = vmatpush.msrb.mxu3 %v1200_v43 }
  0x21   :  { %502 = vmatpush.msra.mxu2 %v1135_v5 }
  0x23   :  { %503 = vmatpush.msra.mxu2 %v1146_v6 }
  0x8c   :  { %v88_v11 = vpop.f32.mrf.mxu0 }
  0x8d   :  { %v89_v12 = vadd.f32 %v920_v10, %v88_v11 }
  0x8f   :  { %v91_v13 = vmax.f32 %v89_v12, 0.0 }
  0x91   :  { %875 = vmatmul.msk.f32.vlgmr.msra.gmra.mxu1 %vm67_vm0, %v91_v13 }
  0x92   :  { %474 = vmatpush.msra.mxu1 %v1181_v40 }
  0x94   :  { %475 = vmatpush.msra.mxu1 %v1186_v41 }
  0x96   :  { %476 = vmatpush.msra.mxu1 %v1193_v42 }
  0x97   :  { %v150_v16 = vpop.f32.mrf.mxu2 }
  0x98   :  { %477 = vmatpush.msra.mxu1 %v1200_v43 }
 0x10e   :  { %v118_v15 = vpop.f32.mrf.mxu1 }
 0x10f   :  { %v1169_v17 = vadd.f32 %v921_v14, %v118_v15 }
 0x111   :  { %v153_v18 = vadd.f32 %v150_v16, %v1169_v17 }
 0x113   :  { %v876_v19 = vmul.f32 -1.442695, %v153_v18 }
 0x115   :  { %923 = vpow2.f32 %v876_v19 }
 0x11b   :  { %v924_v20 = vpop.eup %923 }
 0x11c   :  { %v157_v21 = vadd.f32 1.0, %v924_v20 }
 0x11e   :  { %925 = vrcp.f32 %v157_v21  ;;  %v169_v25 = vand.u32 2147483648, %v157_v21  ;;  %v167_v27 = vand.u32 2147483647, %v157_v21  ;;  %vm163_vm2 = vweird.f32 %v157_v21 }
 0x120   :  { %v170_v29 = vor.u32 1.1754944e-38, %v169_v25  ;;  %vm168_vm4 = vcmp.eq.f32.partialorder %v167_v27, 8.507059e+37 }
 0x124   :  { %v926_v22 = vpop.eup %925 }
 0x125   :  { %v159_v23 = vmul.f32 %v926_v22, %v157_v21  ;;  %vm164_vm1 = vweird.f32 %v926_v22 }
 0x126   :  { %vm165_vm3 = vmor %vm163_vm2, %vm164_vm1 }
 0x127   :  { %v160_v24 = vsub.f32 1.0, %v159_v23 }
 0x129   :  { %v161_v26 = vmul.f32 %v926_v22, %v160_v24 }
 0x12b   :  { %v162_v28 = vadd.f32 %v926_v22, %v161_v26 }
 0x12d   :  { %v166_v30 = vsel %vm165_vm3, %v926_v22, %v162_v28 }
 0x12e   :  { %v171_v31 = vsel %vm168_vm4, %v170_v29, %v166_v30 }
 0x12f   :  { %v173_v32 = vmul.f32 2.0, %v171_v31  ;;  %v175_v36 = vmul.f32 0.0, %v171_v31 }
 0x131   :  { %v877_v33 = vadd.f32 -1.0, %v173_v32 }
 0x133   :  { %177 = vrot.lane.b32.xlu0 %v877_v33, %s1056_s2 }
 0x1a5   :  { %v178_v34 = vpop.permute.xlu0 %177 }
 0x1a6   :  { %v180_v35 = vmul.f32 %v178_v34, %v171_v31 }
 0x1a8   :  { %182 = vrot.lane.b32.xlu0 %v180_v35, %s1057_s5 }
 0x21a   :  { %v183_v37 = vpop.permute.xlu0 %182 }
 0x21b   :  { %v1174_v38 = vadd.f32 %v183_v37, %v175_v36 }
 0x21d   :  { %927 = vtanh.f32 %v1174_v38 }
 0x223   :  { %v928_v39 = vpop.eup %927 }
 0x224   :  { %188 = vrot.lane.b32.xlu1 %v928_v39, %s1056_s2 }
 0x296   :  { %v189_v44 = vpop.permute.xlu1 %188 }
 0x297   :  { %v191_v45 = vmul.f32 %v189_v44, %v171_v31 }
 0x299   :  { %193 = vrot.lane.b32.xlu1 %v191_v45, %s1057_s5 }
 0x30b   :  { %v194_v46 = vpop.permute.xlu1 %193 }
 0x30c   :  { %878 = vmatmul.msk.f32.vlgmr.msra.gmra.mxu3 %vm129_vm5, %v194_v46  ;;  %879 = vmatmul.msk.f32.vlgmr.msrb.gmra.mxu0 %vm129_vm5, %v194_v46 }
 0x30d   :  { %590 = vmatpush.msrb.mxu0 %v1124_v3  ;;  %564 = vmatpush.msra.mxu3 %v1181_v40 }
 0x30f   :  { %591 = vmatpush.msrb.mxu0 %v1129_v4  ;;  %565 = vmatpush.msra.mxu3 %v1186_v41 }
 0x311   :  { %592 = vmatpush.msrb.mxu0 %v1135_v5  ;;  %566 = vmatpush.msra.mxu3 %v1193_v42 }
 0x313   :  { %593 = vmatpush.msrb.mxu0 %v1146_v6  ;;  %567 = vmatpush.msra.mxu3 %v1200_v43 }
 0x389   :  { %v235_v47 = vpop.f32.mrf.mxu0 }
 0x38a   :  { %v238_v48 = vadd.f32 %v235_v47, %v1169_v17 }
 0x38c   :  { %v880_v49 = vmul.f32 -1.442695, %v238_v48 }
 0x38e   :  { %929 = vpow2.f32 %v880_v49 }
 0x38f   :  { %v214_v50 = vpop.f32.mrf.mxu3 }
 0x390   :  { %217 = vst.msk [vmem:[#allocation7] sm:$0xff] %vm67_vm0, %v214_v50 }
 0x394   :  { %v930_v51 = vpop.eup %929 }
 0x395   :  { %v242_v52 = vadd.f32 1.0, %v930_v51 }
 0x397   :  { %931 = vrcp.f32 %v242_v52  ;;  %v254_v56 = vand.u32 2147483648, %v242_v52  ;;  %v252_v58 = vand.u32 2147483647, %v242_v52  ;;  %vm248_vm7 = vweird.f32 %v242_v52 }
 0x399   :  { %v255_v60 = vor.u32 1.1754944e-38, %v254_v56  ;;  %vm253_vm9 = vcmp.eq.f32.partialorder %v252_v58, 8.507059e+37 }
 0x39d   :  { %v932_v53 = vpop.eup %931 }
 0x39e   :  { %v244_v54 = vmul.f32 %v932_v53, %v242_v52  ;;  %vm249_vm6 = vweird.f32 %v932_v53 }
 0x39f   :  { %vm250_vm8 = vmor %vm248_vm7, %vm249_vm6 }
 0x3a0   :  { %v245_v55 = vsub.f32 1.0, %v244_v54 }
 0x3a2   :  { %v246_v57 = vmul.f32 %v932_v53, %v245_v55 }
 0x3a4   :  { %v247_v59 = vadd.f32 %v932_v53, %v246_v57 }
 0x3a6   :  { %v251_v61 = vsel %vm250_vm8, %v932_v53, %v247_v59 }
 0x3a7   :  { %v256_v62 = vsel %vm253_vm9, %v255_v60, %v251_v61 }
 0x3a8   :  { %v258_v63 = vmul.f32 2.0, %v256_v62  ;;  %v260_v7 = vmul.f32 %v256_v62, %v1174_v38 }
 0x3aa   :  { %v881_v0 = vadd.f32 -1.0, %v258_v63 }
 0x3ac   :  { %262 = vrot.lane.b32.xlu2 %v881_v0, %s1056_s2 }
 0x406   :  { %v263_v1 = vpop.permute.xlu2 %262 }
 0x407   :  { %v265_v2 = vmul.f32 %v263_v1, %v256_v62 }
 0x409   :  { %267 = vrot.lane.b32.xlu2 %v265_v2, %s1057_s5 }
 0x463   :  { %v268_v8 = vpop.permute.xlu2 %267 }
 0x464   :  { %v270_v9 = vadd.f32 %v268_v8, %v260_v7 }
 0x466   :  { %933 = vtanh.f32 %v270_v9 }
 0x46c   :  { %v934_v10 = vpop.eup %933 }
 0x46d   :  { %273 = vrot.lane.b32.xlu0 %v934_v10, %s1056_s2 }
 0x4df   :  { %v274_v11 = vpop.permute.xlu0 %273 }
 0x4e0   :  { %v276_v12 = vmul.f32 %v274_v11, %v256_v62 }
 0x4e2   :  { %278 = vrot.lane.b32.xlu1 %v276_v12, %s1057_s5 }
 0x554   :  { %v279_v13 = vpop.permute.xlu1 %278 }
 0x555   :  { %882 = vmatmul.msk.f32.vlgmr.msrb.gmra.mxu1 %vm129_vm5, %v279_v13  ;;  %883 = vmatmul.msk.f32.vlgmr.msrb.gmra.mxu2 %vm129_vm5, %v279_v13 }
 0x556   :  { %680 = vmatpush.msrb.mxu2 %v1124_v3  ;;  %654 = vmatpush.msrb.mxu1 %v1181_v40 }
 0x558   :  { %681 = vmatpush.msrb.mxu2 %v1129_v4  ;;  %655 = vmatpush.msrb.mxu1 %v1186_v41 }
 0x55a   :  { %682 = vmatpush.msrb.mxu2 %v1135_v5  ;;  %656 = vmatpush.msrb.mxu1 %v1193_v42 }
 0x55c   :  { %683 = vmatpush.msrb.mxu2 %v1146_v6  ;;  %657 = vmatpush.msrb.mxu1 %v1200_v43 }
 0x5d8   :  { %v325_v14 = vpop.f32.mrf.mxu2 }
 0x5d9   :  { %v328_v15 = vadd.f32 %v325_v14, %v1169_v17 }
 0x5db   :  { %v884_v16 = vmul.f32 -1.442695, %v328_v15 }
 0x5dd   :  { %935 = vpow2.f32 %v884_v16 }
 0x5e3   :  { %v936_v18 = vpop.eup %935 }
 0x5e4   :  { %v332_v19 = vadd.f32 1.0, %v936_v18 }
 0x5e6   :  { %937 = vrcp.f32 %v332_v19  ;;  %v344_v23 = vand.u32 2147483648, %v332_v19  ;;  %v342_v25 = vand.u32 2147483647, %v332_v19  ;;  %vm338_vm11 = vweird.f32 %v332_v19 }
 0x5e8   :  { %v345_v27 = vor.u32 1.1754944e-38, %v344_v23  ;;  %vm343_vm13 = vcmp.eq.f32.partialorder %v342_v25, 8.507059e+37 }
 0x5ec   :  { %v938_v20 = vpop.eup %937 }
 0x5ed   :  { %v334_v21 = vmul.f32 %v938_v20, %v332_v19  ;;  %vm339_vm10 = vweird.f32 %v938_v20 }
 0x5ee   :  { %vm340_vm12 = vmor %vm338_vm11, %vm339_vm10 }
 0x5ef   :  { %v335_v22 = vsub.f32 1.0, %v334_v21 }
 0x5f1   :  { %v336_v24 = vmul.f32 %v938_v20, %v335_v22 }
 0x5f3   :  { %v337_v26 = vadd.f32 %v938_v20, %v336_v24 }
 0x5f5   :  { %v341_v28 = vsel %vm340_vm12, %v938_v20, %v337_v26 }
 0x5f6   :  { %v346_v29 = vsel %vm343_vm13, %v345_v27, %v341_v28 }
 0x5f7   :  { %v348_v30 = vmul.f32 2.0, %v346_v29  ;;  %v350_v34 = vmul.f32 %v346_v29, %v270_v9 }
 0x5f9   :  { %v885_v31 = vadd.f32 -1.0, %v348_v30 }
 0x5fb   :  { %352 = vrot.lane.b32.xlu2 %v885_v31, %s1056_s2 }
 0x655   :  { %v353_v32 = vpop.permute.xlu2 %352 }
 0x656   :  { %v355_v33 = vmul.f32 %v353_v32, %v346_v29 }
 0x658   :  { %357 = vrot.lane.b32.xlu0 %v355_v33, %s1057_s5 }
 0x6ca   :  { %v358_v35 = vpop.permute.xlu0 %357 }
 0x6cb   :  { %v360_v36 = vadd.f32 %v358_v35, %v350_v34 }
 0x6cd   :  { %939 = vtanh.f32 %v360_v36 }
 0x6d3   :  { %v940_v37 = vpop.eup %939 }
 0x6d4   :  { %363 = vrot.lane.b32.xlu1 %v940_v37, %s1056_s2 }
 0x746   :  { %v364_v38 = vpop.permute.xlu1 %363 }
 0x747   :  { %v366_v39 = vmul.f32 %v364_v38, %v346_v29 }
 0x749   :  { %368 = vrot.lane.b32.xlu2 %v366_v39, %s1057_s5 }
 0x7a3   :  { %v369_v44 = vpop.permute.xlu2 %368 }
 0x7a4   :  { %886 = vmatmul.msk.f32.vlgmr.msrb.gmra.mxu3 %vm129_vm5, %v369_v44  ;;  %887 = vmatmul.msk.f32.vlgmr.msra.gmra.mxu0 %vm129_vm5, %v369_v44 }
 0x7a5   :  { %770 = vmatpush.msra.mxu0 %v1124_v3  ;;  %744 = vmatpush.msrb.mxu3 %v1181_v40 }
 0x7a7   :  { %771 = vmatpush.msra.mxu0 %v1129_v4  ;;  %745 = vmatpush.msrb.mxu3 %v1186_v41 }
 0x7a9   :  { %772 = vmatpush.msra.mxu0 %v1135_v5  ;;  %746 = vmatpush.msrb.mxu3 %v1193_v42 }
 0x7ab   :  { %773 = vmatpush.msra.mxu0 %v1146_v6  ;;  %747 = vmatpush.msrb.mxu3 %v1200_v43 }
 0x821   :  { %v415_v45 = vpop.f32.mrf.mxu0 }
 0x822   :  { %v418_v46 = vadd.f32 %v415_v45, %v1169_v17 }
 0x824   :  { %v888_v47 = vmul.f32 -1.442695, %v418_v46 }
 0x826   :  { %941 = vpow2.f32 %v888_v47 }
 0x82c   :  { %v942_v3 = vpop.eup %941 }
 0x82d   :  { %v422_v48 = vadd.f32 1.0, %v942_v3 }
 0x82f   :  { %943 = vrcp.f32 %v422_v48  ;;  %v434_v51 = vand.u32 2147483648, %v422_v48  ;;  %v432_v5 = vand.u32 2147483647, %v422_v48  ;;  %vm428_vm15 = vweird.f32 %v422_v48 }
 0x831   :  { %v435_v6 = vor.u32 1.1754944e-38, %v434_v51  ;;  %vm433_vm1 = vcmp.eq.f32.partialorder %v432_v5, 8.507059e+37 }
 0x835   :  { %v944_v49 = vpop.eup %943 }
 0x836   :  { %v424_v4 = vmul.f32 %v944_v49, %v422_v48  ;;  %vm429_vm14 = vweird.f32 %v944_v49 }
 0x837   :  { %vm430_vm0 = vmor %vm428_vm15, %vm429_vm14 }
 0x838   :  { %v425_v50 = vsub.f32 1.0, %v424_v4 }
 0x83a   :  { %v426_v52 = vmul.f32 %v944_v49, %v425_v50 }
 0x83c   :  { %v427_v53 = vadd.f32 %v944_v49, %v426_v52 }
 0x83e   :  { %v431_v54 = vsel %vm430_vm0, %v944_v49, %v427_v53 }
 0x83f   :  { %v436_v55 = vsel %vm433_vm1, %v435_v6, %v431_v54 }
 0x840   :  { %v438_v56 = vmul.f32 2.0, %v436_v55  ;;  %v440_v60 = vmul.f32 %v436_v55, %v360_v36 }
 0x842   :  { %v889_v57 = vadd.f32 -1.0, %v438_v56 }
 0x844   :  { %442 = vrot.lane.b32.xlu0 %v889_v57, %s1056_s2 }
 0x8b6   :  { %v443_v58 = vpop.permute.xlu0 %442 }
 0x8b7   :  { %v445_v59 = vmul.f32 %v443_v58, %v436_v55 }
 0x8b9   :  { %447 = vrot.lane.b32.xlu1 %v445_v59, %s1057_s5 }
 0x92b   :  { %v448_v61 = vpop.permute.xlu1 %447 }
 0x92c   :  { %v450_v62 = vadd.f32 %v448_v61, %v440_v60 }
 0x92e   :  { %945 = vtanh.f32 %v450_v62 }
 0x934   :  { %v946_v63 = vpop.eup %945 }
 0x935   :  { %453 = vrot.lane.b32.xlu2 %v946_v63, %s1056_s2 }
 0x98f   :  { %v454_v0 = vpop.permute.xlu2 %453 }
 0x990   :  { %v456_v1 = vmul.f32 %v454_v0, %v436_v55 }
 0x992   :  { %458 = vrot.lane.b32.xlu0 %v456_v1, %s1057_s5 }
 0xa04   :  { %v459_v2 = vpop.permute.xlu0 %458 }
 0xa05   :  { %890 = vmatmul.msk.f32.vlgmr.msra.gmra.mxu1 %vm129_vm5, %v459_v2  ;;  %891 = vmatmul.msk.f32.vlgmr.msra.gmra.mxu2 %vm129_vm5, %v459_v2 }
 0xa06   :  { %834 = vmatpush.msra.mxu1 %v1181_v40 }
 0xa08   :  { %835 = vmatpush.msra.mxu1 %v1186_v41 }
 0xa0a   :  { %836 = vmatpush.msra.mxu1 %v1193_v42 }
 0xa0c   :  { %837 = vmatpush.msra.mxu1 %v1200_v43 }
 0xa88   :  { %v505_v7 = vpop.f32.mrf.mxu2 }
 0xa89   :  { %v508_v8 = vadd.f32 %v505_v7, %v1169_v17 }
 0xa8b   :  { %v892_v9 = vmul.f32 -1.442695, %v508_v8 }
 0xa8d   :  { %947 = vpow2.f32 %v892_v9 }
 0xa93   :  { %v948_v10 = vpop.eup %947 }
 0xa94   :  { %v512_v11 = vadd.f32 1.0, %v948_v10 }
 0xa96   :  { %949 = vrcp.f32 %v512_v11  ;;  %v524_v15 = vand.u32 2147483648, %v512_v11  ;;  %v522_v40 = vand.u32 2147483647, %v512_v11  ;;  %vm518_vm3 = vweird.f32 %v512_v11 }
 0xa98   :  { %v525_v42 = vor.u32 1.1754944e-38, %v524_v15  ;;  %vm523_vm6 = vcmp.eq.f32.partialorder %v522_v40, 8.507059e+37 }
 0xa9c   :  { %v950_v12 = vpop.eup %949 }
 0xa9d   :  { %v514_v13 = vmul.f32 %v950_v12, %v512_v11  ;;  %vm519_vm2 = vweird.f32 %v950_v12 }
 0xa9e   :  { %vm520_vm4 = vmor %vm518_vm3, %vm519_vm2  ;;  %vm306_vm3 = vcmask 261248  }
 0xa9f   :  { %v515_v14 = vsub.f32 1.0, %v514_v13 }
 0xaa1   :  { %v516_v16 = vmul.f32 %v950_v12, %v515_v14 }
 0xaa3   :  { %v517_v41 = vadd.f32 %v950_v12, %v516_v16 }
 0xaa5   :  { %v521_v43 = vsel %vm520_vm4, %v950_v12, %v517_v41  ;;  %vm396_vm4 = vcmask 392448  }
 0xaa6   :  { %v526_v18 = vsel %vm523_vm6, %v525_v42, %v521_v43  ;;  %vm486_vm6 = vcmask 523648  }
 0xaa7   :  { %v528_v19 = vmul.f32 2.0, %v526_v18  ;;  %v530_v23 = vmul.f32 %v526_v18, %v450_v62 }
 0xaa9   :  { %v893_v20 = vadd.f32 -1.0, %v528_v19 }
 0xaab   :  { %532 = vrot.lane.b32.xlu1 %v893_v20, %s1056_s2 }
 0xb1d   :  { %v533_v21 = vpop.permute.xlu1 %532 }
 0xb1e   :  { %v535_v22 = vmul.f32 %v533_v21, %v526_v18 }
 0xb20   :  { %537 = vrot.lane.b32.xlu2 %v535_v22, %s1057_s5 }
 0xb7a   :  { %v538_v24 = vpop.permute.xlu2 %537 }
 0xb7b   :  { %v540_v25 = vadd.f32 %v538_v24, %v530_v23 }
 0xb7d   :  { %951 = vtanh.f32 %v540_v25 }
 0xb83   :  { %v952_v26 = vpop.eup %951 }
 0xb84   :  { %543 = vrot.lane.b32.xlu0 %v952_v26, %s1056_s2 }
 0xbf6   :  { %v544_v27 = vpop.permute.xlu0 %543 }
 0xbf7   :  { %v546_v28 = vmul.f32 %v544_v27, %v526_v18 }
 0xbf9   :  { %548 = vrot.lane.b32.xlu1 %v546_v28, %s1057_s5 }
 0xc6b   :  { %v549_v29 = vpop.permute.xlu1 %548 }
 0xc6c   :  { %894 = vmatmul.msk.f32.vlgmr.msra.gmra.mxu3 %vm129_vm5, %v549_v29  ;;  %895 = vmatmul.msk.f32.vlgmr.msrb.gmra.mxu0 %vm129_vm5, %v549_v29 }
 0xce9   :  { %v595_v30 = vpop.f32.mrf.mxu0 }
 0xcea   :  { %v598_v31 = vadd.f32 %v595_v30, %v1169_v17 }
 0xcec   :  { %v896_v32 = vmul.f32 -1.442695, %v598_v31 }
 0xcee   :  { %953 = vpow2.f32 %v896_v32 }
 0xcf4   :  { %v954_v33 = vpop.eup %953 }
 0xcf5   :  { %v602_v34 = vadd.f32 1.0, %v954_v33 }
 0xcf7   :  { %955 = vrcp.f32 %v602_v34  ;;  %v614_v38 = vand.u32 2147483648, %v602_v34  ;;  %v612_v44 = vand.u32 2147483647, %v602_v34  ;;  %vm608_vm8 = vweird.f32 %v602_v34 }
 0xcf9   :  { %v615_v46 = vor.u32 1.1754944e-38, %v614_v38  ;;  %vm613_vm10 = vcmp.eq.f32.partialorder %v612_v44, 8.507059e+37  ;;  %v389_v38 = vpop.f32.mrf.mxu3 }
 0xcfd   :  { %v956_v35 = vpop.eup %955 }
 0xcfe   :  { %v604_v36 = vmul.f32 %v956_v35, %v602_v34  ;;  %vm609_vm7 = vweird.f32 %v956_v35 }
 0xcff   :  { %vm610_vm9 = vmor %vm608_vm8, %vm609_vm7  ;;  %vm576_vm7 = vcmask 654848   ;;  %vm666_vm8 = vcmask 786048  }
 0xd00   :  { %v605_v37 = vsub.f32 1.0, %v604_v36 }
 0xd02   :  { %v606_v39 = vmul.f32 %v956_v35, %v605_v37  ;;  %v299_v37 = vpop.f32.mrf.mxu1 }
 0xd04   :  { %v607_v45 = vadd.f32 %v956_v35, %v606_v39  ;;  %v569_v39 = vpop.f32.mrf.mxu3 }
 0xd06   :  { %v611_v47 = vsel %vm610_vm9, %v956_v35, %v607_v45  ;;  %vm756_vm9 = vcmask 917248  }
 0xd07   :  { %v616_v3 = vsel %vm613_vm10, %v615_v46, %v611_v47  ;;  %vm846_vm10 = vcmask 1048448  }
 0xd08   :  { %v618_v48 = vmul.f32 2.0, %v616_v3  ;;  %v620_v51 = vmul.f32 %v616_v3, %v540_v25 }
 0xd0a   :  { %v897_v49 = vadd.f32 -1.0, %v618_v48  ;;  %v479_v48 = vpop.f32.mrf.mxu1 }
 0xd0c   :  { %622 = vrot.lane.b32.xlu2 %v897_v49, %s1056_s2 }
 0xd66   :  { %v623_v4 = vpop.permute.xlu2 %622 }
 0xd67   :  { %v625_v50 = vmul.f32 %v623_v4, %v616_v3 }
 0xd69   :  { %627 = vrot.lane.b32.xlu0 %v625_v50, %s1057_s5 }
 0xddb   :  { %v628_v52 = vpop.permute.xlu0 %627 }
 0xddc   :  { %v630_v5 = vadd.f32 %v628_v52, %v620_v51 }
 0xdde   :  { %957 = vtanh.f32 %v630_v5 }
 0xde4   :  { %v958_v53 = vpop.eup %957 }
 0xde5   :  { %633 = vrot.lane.b32.xlu1 %v958_v53, %s1056_s2 }
 0xe57   :  { %v634_v6 = vpop.permute.xlu1 %633 }
 0xe58   :  { %v636_v54 = vmul.f32 %v634_v6, %v616_v3 }
 0xe5a   :  { %638 = vrot.lane.b32.xlu2 %v636_v54, %s1057_s5 }
 0xeb4   :  { %v639_v55 = vpop.permute.xlu2 %638 }
 0xeb5   :  { %898 = vmatmul.msk.f32.vlgmr.msrb.gmra.mxu1 %vm129_vm5, %v639_v55  ;;  %899 = vmatmul.msk.f32.vlgmr.msrb.gmra.mxu2 %vm129_vm5, %v639_v55 }
 0xf32   :  { %v659_v49 = vpop.f32.mrf.mxu1 }
 0xf38   :  { %v685_v56 = vpop.f32.mrf.mxu2 }
 0xf39   :  { %v688_v57 = vadd.f32 %v685_v56, %v1169_v17 }
 0xf3b   :  { %v900_v58 = vmul.f32 -1.442695, %v688_v57 }
 0xf3d   :  { %959 = vpow2.f32 %v900_v58  ;;  %v922_v58 = vld [vmem:[%s1310_s7] ss:$0 sm:$0xff] }
 0xf43   :  { %v960_v59 = vpop.eup %959 }
 0xf44   :  { %v692_v60 = vadd.f32 1.0, %v960_v59 }
 0xf46   :  { %961 = vrcp.f32 %v692_v60  ;;  %v704_v0 = vand.u32 2147483648, %v692_v60  ;;  %v702_v2 = vand.u32 2147483647, %v692_v60  ;;  %vm698_vm12 = vweird.f32 %v692_v60 }
 0xf48   :  { %v705_v8 = vor.u32 1.1754944e-38, %v704_v0  ;;  %vm703_vm14 = vcmp.eq.f32.partialorder %v702_v2, 8.507059e+37 }
 0xf4c   :  { %v962_v61 = vpop.eup %961 }
 0xf4d   :  { %v694_v62 = vmul.f32 %v962_v61, %v692_v60  ;;  %vm699_vm11 = vweird.f32 %v962_v61 }
 0xf4e   :  { %vm700_vm13 = vmor %vm698_vm12, %vm699_vm11 }
 0xf4f   :  { %v695_v63 = vsub.f32 1.0, %v694_v62 }
 0xf51   :  { %v696_v1 = vmul.f32 %v962_v61, %v695_v63 }
 0xf53   :  { %v697_v7 = vadd.f32 %v962_v61, %v696_v1 }
 0xf55   :  { %v701_v9 = vsel %vm700_vm13, %v962_v61, %v697_v7 }
 0xf56   :  { %v706_v10 = vsel %vm703_vm14, %v705_v8, %v701_v9 }
 0xf57   :  { %v708_v11 = vmul.f32 2.0, %v706_v10  ;;  %v710_v15 = vmul.f32 %v706_v10, %v630_v5 }
 0xf59   :  { %v901_v12 = vadd.f32 -1.0, %v708_v11 }
 0xf5b   :  { %712 = vrot.lane.b32.xlu0 %v901_v12, %s1056_s2 }
 0xfcd   :  { %v713_v13 = vpop.permute.xlu0 %712 }
 0xfce   :  { %v715_v14 = vmul.f32 %v713_v13, %v706_v10 }
 0xfd0   :  { %717 = vrot.lane.b32.xlu1 %v715_v14, %s1057_s5 }
0x1042   :  { %v718_v16 = vpop.permute.xlu1 %717 }
0x1043   :  { %v720_v40 = vadd.f32 %v718_v16, %v710_v15 }
0x1045   :  { %963 = vtanh.f32 %v720_v40 }
0x104b   :  { %v964_v41 = vpop.eup %963 }
0x104c   :  { %723 = vrot.lane.b32.xlu2 %v964_v41, %s1056_s2 }
0x10a6   :  { %v724_v42 = vpop.permute.xlu2 %723 }
0x10a7   :  { %v726_v43 = vmul.f32 %v724_v42, %v706_v10 }
0x10a9   :  { %728 = vrot.lane.b32.xlu0 %v726_v43, %s1057_s5 }
0x111b   :  { %v729_v18 = vpop.permute.xlu0 %728 }
0x111c   :  { %902 = vmatmul.msk.f32.vlgmr.msrb.gmra.mxu3 %vm129_vm5, %v729_v18  ;;  %903 = vmatmul.msk.f32.vlgmr.msra.gmra.mxu0 %vm129_vm5, %v729_v18 }
0x1199   :  { %v775_v19 = vpop.f32.mrf.mxu0 }
0x119a   :  { %v778_v20 = vadd.f32 %v775_v19, %v1169_v17 }
0x119c   :  { %v904_v21 = vmul.f32 -1.442695, %v778_v20 }
0x119e   :  { %965 = vpow2.f32 %v904_v21 }
0x119f   :  { %v749_v52 = vpop.f32.mrf.mxu3 }
0x11a4   :  { %v966_v22 = vpop.eup %965 }
0x11a5   :  { %v782_v23 = vadd.f32 1.0, %v966_v22 }
0x11a7   :  { %967 = vrcp.f32 %v782_v23  ;;  %v794_v27 = vand.u32 2147483648, %v782_v23  ;;  %v792_v29 = vand.u32 2147483647, %v782_v23  ;;  %vm788_vm0 = vweird.f32 %v782_v23 }
0x11a9   :  { %v795_v31 = vor.u32 1.1754944e-38, %v794_v27  ;;  %vm793_vm2 = vcmp.eq.f32.partialorder %v792_v29, 8.507059e+37 }
0x11ad   :  { %v968_v24 = vpop.eup %967 }
0x11ae   :  { %v784_v25 = vmul.f32 %v968_v24, %v782_v23  ;;  %vm789_vm15 = vweird.f32 %v968_v24 }
0x11af   :  { %vm790_vm1 = vmor %vm788_vm0, %vm789_vm15 }
0x11b0   :  { %v785_v26 = vsub.f32 1.0, %v784_v25 }
0x11b2   :  { %v786_v28 = vmul.f32 %v968_v24, %v785_v26 }
0x11b4   :  { %v787_v30 = vadd.f32 %v968_v24, %v786_v28 }
0x11b6   :  { %v791_v32 = vsel %vm790_vm1, %v968_v24, %v787_v30 }
0x11b7   :  { %v796_v33 = vsel %vm793_vm2, %v795_v31, %v791_v32 }
0x11b8   :  { %v798_v17 = vmul.f32 2.0, %v796_v33  ;;  %v800_v44 = vmul.f32 %v796_v33, %v720_v40 }
0x11ba   :  { %v905_v34 = vadd.f32 -1.0, %v798_v17 }
0x11bc   :  { %802 = vrot.lane.b32.xlu1 %v905_v34, %s1056_s2 }
0x122e   :  { %v803_v35 = vpop.permute.xlu1 %802 }
0x122f   :  { %v805_v36 = vmul.f32 %v803_v35, %v796_v33 }
0x1231   :  { %807 = vrot.lane.b32.xlu2 %v805_v36, %s1057_s5 }
0x1239   :  { %303 = vrot.lane.b32.xlu2 %v299_v37, %s1058_s6 }
0x1241   :  { %573 = vrot.lane.b32.xlu2 %v569_v39, %s1056_s2 }
0x128b   :  { %v808_v45 = vpop.permute.xlu2 %807 }
0x128c   :  { %v810_v46 = vadd.f32 %v808_v45, %v800_v44 }
0x128e   :  { %969 = vtanh.f32 %v810_v46 }
0x1293   :  { %v304_v47 = vpop.permute.xlu2 %303 }
0x1294   :  { %v970_v3 = vpop.eup %969  ;;  %307 = vst.msk [vmem:[#allocation7] sm:$0xff] %vm306_vm3, %v304_v47 }
0x1295   :  { %813 = vrot.lane.b32.xlu0 %v970_v3, %s1056_s2 }
0x129b   :  { %v574_v6 = vpop.permute.xlu2 %573 }
0x129d   :  { %393 = vrot.lane.b32.xlu0 %v389_v38, %s1057_s5 }
0x12a5   :  { %663 = vrot.lane.b32.xlu0 %v659_v49, %s1059_s15 }
0x1307   :  { %v814_v4 = vpop.permute.xlu0 %813 }
0x1308   :  { %v816_v50 = vmul.f32 %v814_v4, %v796_v33 }
0x130a   :  { %818 = vrot.lane.b32.xlu1 %v816_v50, %s1057_s5 }
0x130f   :  { %v394_v51 = vpop.permute.xlu0 %393 }
0x1310   :  { %397 = vst.msk [vmem:[#allocation7] sm:$0xff] %vm396_vm4, %v394_v51 }
0x1312   :  { %483 = vrot.lane.b32.xlu1 %v479_v48, %s1060_s16 }
0x1317   :  { %v664_v54 = vpop.permute.xlu0 %663 }
0x131a   :  { %753 = vrot.lane.b32.xlu1 %v749_v52, %s1061_s0 }
0x137c   :  { %v819_v5 = vpop.permute.xlu1 %818 }
0x137d   :  { %906 = vmatmul.msk.f32.vlgmr.msra.gmra.mxu1 %vm129_vm5, %v819_v5 }
0x1384   :  { %v484_v53 = vpop.permute.xlu1 %483 }
0x1385   :  { %487 = vst.msk [vmem:[#allocation7] sm:$0xff] %vm486_vm6, %v484_v53 }
0x1386   :  { %577 = vst.msk [vmem:[#allocation7] sm:$0xff] %vm576_vm7, %v574_v6 }
0x1387   :  { %667 = vst.msk [vmem:[#allocation7] sm:$0xff] %vm666_vm8, %v664_v54 }
0x138c   :  { %v754_v55 = vpop.permute.xlu1 %753 }
0x138d   :  { %757 = vst.msk [vmem:[#allocation7] sm:$0xff] %vm756_vm9, %v754_v55 }
0x13fa   :  { %v839_v56 = vpop.f32.mrf.mxu1 }
0x13fb   :  { %843 = vrot.lane.b32.xlu2 %v839_v56, %s1062_s17 }
0x1455   :  { %v844_v57 = vpop.permute.xlu2 %843 }
0x1456   :  { %847 = vst.msk [vmem:[#allocation7] sm:$0xff] %vm846_vm10, %v844_v57 }
0x145d   :  { %v848_v59 = vld [vmem:[#allocation7] sm:$0xff] }
0x145e   :  { %v853_v60 = vadd.f32 %v922_v58, %v848_v59 }
0x1460   :  { %971 = vtanh.f32 %v853_v60 }
0x1466   :  { %v972_v61 = vpop.eup %971 }
0x1467   :  { %855 = vst [vmem:[#allocation7] sm:$0xff] %v972_v61 }
0x1468   :  { %866 = dma.vmem_to_hbm [thread:$0]  %s862_s20, 128, %s864_s23, [#allocation4]  }
0x1469   :  { %1049 = dma.done.wait [#allocation4], 128  }
0x146a   :  { %1050 = vsyncadd [#allocation4], 4294967168 }
0x146b   :  { %871 = vsyncpa [#allocation3], 1 }
0x146c   :  { %872 = vsyncpa [#allocation6], 1 }
0x146d   :  { %873 = vsyncpa [#allocation4], 1 }

</bundles_post_ra>
